<compile_context>
chip_gen: v5e
topology: v5e:2x2
jax: 0.10.0
libtpu: 0.0.40
codegen_flags: <defaults>
</compile_context>

<pallas_src>
import jax
import jax.numpy as jnp
import numpy as np
from jax.experimental import pallas as pl
from jax.experimental.pallas import tpu as pltpu

NEG_SLOPE = 0.01      # nn.LeakyReLU default
BN_EPS = 1e-5         # nn.BatchNorm1d default
LANE = 128            # lane width
SUBLANE = 8           # f32 sublane width


def _round_up(x, m):
    return (x + m - 1) // m * m


def _full_spec(shape):
    # grid = (): whole padded, lane-dense array resident in VMEM.
    return pl.BlockSpec(shape, lambda: (0,) * len(shape),
                        memory_space=pltpu.MemorySpace.VMEM)


# ---------------------------------------------------------------------------
# Kernels
# ---------------------------------------------------------------------------
def _head_only_kernel(x_ref, w_ref, b_ref, o_ref):
    # num_hidden_layers == 0: Flatten -> Linear only.
    o_ref[...] = (jnp.dot(x_ref[...], w_ref[...],
                          preferred_element_type=jnp.float32) + b_ref[...])


def _make_mlp_kernel(real_n, has_rest, has_out):
    """Fused [Linear -> BN(train) -> LeakyReLU]*L -> (Linear head).

    Grid axis 0 iterates over hidden layers ("arbitrary"): the stacked-weight
    BlockSpec is double-buffered by the Pallas pipeline, so layer l+1's
    weights stream in while layer l computes.  Activations stay in a bf16
    VMEM scratch across layers (no HBM round-trips).
    """
    def kernel(*refs):
        idx = 0
        x_ref = refs[idx]; idx += 1            # (N_pad, In_pad)   bf16
        w0_ref = refs[idx]; idx += 1           # (In_pad, F_pad)   bf16
        if has_rest:
            wrest_ref = refs[idx]; idx += 1    # (1, F_pad, F_pad) bf16 (this layer)
        ss_ref = refs[idx]; idx += 1           # (1, 2, F_pad) f32: [gamma; beta]
        if has_out:
            wout_ref = refs[idx]; idx += 1     # (F_pad, Out_pad)  bf16
            bout_ref = refs[idx]; idx += 1     # (1, Out_pad)      f32
        o_ref = refs[idx]; idx += 1            # (N_pad, Out_pad)  f32
        h_ref = refs[idx]                      # (N_pad, F_pad)    bf16 scratch

        l = pl.program_id(0)
        last = pl.num_programs(0) - 1

        n_pad = x_ref.shape[0]
        row_ids = jax.lax.broadcasted_iota(jnp.int32, (n_pad, 1), 0)
        row_mask = (row_ids < real_n).astype(jnp.float32)
        inv_n = jnp.float32(1.0 / real_n)

        def bn_leaky(y):
            # Padded batch rows of y are exactly zero (masked h, zero-padded
            # weights), so unmasked sums are already statistics over the real
            # rows only -- no extra mask passes for the reduction.
            mean = jnp.sum(y, axis=0, keepdims=True) * inv_n
            mean_sq = jnp.sum(y * y, axis=0, keepdims=True) * inv_n
            # E[y^2] - mean^2 (clamped).  NOTE: if activations can carry very
            # large means, switch back to the masked two-pass variance.
            var = jnp.maximum(mean_sq - mean * mean, 0.0)
            ss = ss_ref[0]                                  # (2, F_pad)
            gamma = ss[0:1, :]
            beta = ss[1:2, :]
            scale = gamma * jax.lax.rsqrt(var + BN_EPS)     # (1, F_pad)
            shift = beta - mean * scale                     # (1, F_pad)
            y_hat = y * scale + shift
            act = jnp.where(y_hat > 0, y_hat, NEG_SLOPE * y_hat)
            # Re-zero padded batch rows so the next layer keeps producing
            # exact zeros there (keeps the BN reductions mask-free).
            return (act * row_mask).astype(h_ref.dtype)

        @pl.when(l == 0)
        def _():
            y = jnp.dot(x_ref[...], w0_ref[...],
                        preferred_element_type=jnp.float32)
            h_ref[...] = bn_leaky(y)

        if has_rest:
            @pl.when(l > 0)
            def _():
                y = jnp.dot(h_ref[...], wrest_ref[0],
                            preferred_element_type=jnp.float32)
                h_ref[...] = bn_leaky(y)

        @pl.when(l == last)
        def _():
            if has_out:
                o_ref[...] = (jnp.dot(h_ref[...], wout_ref[...],
                                      preferred_element_type=jnp.float32)
                              + bout_ref[...])
            else:
                o_ref[...] = h_ref[...].astype(o_ref.dtype)

    return kernel


# ---------------------------------------------------------------------------
# Parameters (pre-padded / lane-dense, bf16 MXU weights)
# ---------------------------------------------------------------------------
def init_mlp_params(key, in_features, intermediate_size, out_features,
                    num_hidden_layers, bias=True):
    """PyTorch-style init stored in a padded, TPU-friendly layout.

    Linear weights are stored transposed -- (in, out) -- zero-padded to
    lane-aligned shapes and cast to bf16 for the MXU (f32 accumulation in the
    kernel).  Hidden-layer Linear biases are NOT stored: BatchNorm's batch
    mean subtraction cancels them exactly.  The output head (no BN after it)
    keeps its bias.  Results match PyTorch up to bf16 mixed precision.
    """
    in_pad = _round_up(max(in_features, 1), LANE)
    mid_pad = _round_up(max(intermediate_size, 1), LANE)
    params = {
        "in_features": in_features,
        "intermediate_size": intermediate_size,
        "out_features": out_features,
        "num_hidden_layers": num_hidden_layers,
        "w0": None, "w_rest": None, "ss": None, "out": None,
    }

    if num_hidden_layers > 0:
        key, k0 = jax.random.split(key)
        bound0 = 1.0 / float(np.sqrt(in_features))
        w0 = jax.random.uniform(k0, (in_features, intermediate_size),
                                jnp.float32, -bound0, bound0)
        params["w0"] = (jnp.zeros((in_pad, mid_pad), jnp.float32)
                        .at[:in_features, :intermediate_size].set(w0)
                        .astype(jnp.bfloat16))
        if num_hidden_layers > 1:
            key, kr = jax.random.split(key)
            boundm = 1.0 / float(np.sqrt(intermediate_size))
            wr = jax.random.uniform(
                kr, (num_hidden_layers - 1, intermediate_size, intermediate_size),
                jnp.float32, -boundm, boundm)
            params["w_rest"] = (
                jnp.zeros((num_hidden_layers - 1, mid_pad, mid_pad), jnp.float32)
                .at[:, :intermediate_size, :intermediate_size].set(wr)
                .astype(jnp.bfloat16))
        # Row 0 = gamma (BN default 1), row 1 = beta (0); one DMA per layer.
        # Padded feature columns are harmless: their pre-BN activations are 0.
        params["ss"] = (jnp.zeros((num_hidden_layers, 2, mid_pad), jnp.float32)
                        .at[:, 0, :].set(1.0))

    if out_features > 0:
        fan_in = intermediate_size if num_hidden_layers > 0 else in_features
        fan_in_pad = mid_pad if num_hidden_layers > 0 else in_pad
        out_pad = _round_up(max(out_features, 1), LANE)
        key, kw, kb = jax.random.split(key, 3)
        bound = 1.0 / float(np.sqrt(fan_in))
        w = jax.random.uniform(kw, (fan_in, out_features), jnp.float32,
                               -bound, bound)
        b = (jax.random.uniform(kb, (1, out_features), jnp.float32, -bound, bound)
             if bias else jnp.zeros((1, out_features), jnp.float32))
        w_pad = (jnp.zeros((fan_in_pad, out_pad), jnp.float32)
                 .at[:fan_in, :out_features].set(w).astype(jnp.bfloat16))
        b_pad = jnp.zeros((1, out_pad), jnp.float32).at[:, :out_features].set(b)
        params["out"] = (w_pad, b_pad)
    return params


# ---------------------------------------------------------------------------
# Forward: one fused pallas_call (layer-grid) for the whole network
# ---------------------------------------------------------------------------
def mlp_forward(x, params):
    # nn.Flatten(): (N, C, H, W) -> (N, C*H*W)  (plain-JAX glue + padding)
    n = x.shape[0]
    xf = x.reshape(n, -1)
    in_f = xf.shape[1]
    assert in_f == params["in_features"], (in_f, params["in_features"])

    num_hidden = params["num_hidden_layers"]
    has_out = params["out"] is not None

    if num_hidden == 0 and not has_out:
        return xf.astype(jnp.float32)              # module is just nn.Flatten()

    in_pad = _round_up(max(in_f, 1), LANE)
    n_pad = _round_up(max(n, SUBLANE), SUBLANE)
    # bf16 input DMA: halves HBM->VMEM bytes; the first matmul consumes bf16
    # anyway, so numerics are unchanged.
    x_pad = (jnp.zeros((n_pad, in_pad), jnp.bfloat16)
             .at[:n, :in_f].set(xf.astype(jnp.bfloat16)))

    if num_hidden == 0:
        w_out, b_out = params["out"]
        out_pad = w_out.shape[1]
        res = pl.pallas_call(
            _head_only_kernel,
            out_shape=jax.ShapeDtypeStruct((n_pad, out_pad), jnp.float32),
            in_specs=[_full_spec(x_pad.shape), _full_spec(w_out.shape),
                      _full_spec(b_out.shape)],
            out_specs=_full_spec((n_pad, out_pad)),
        )(x_pad, w_out, b_out)
        return res[:n, :params["out_features"]]

    if n < 2:
        # PyTorch BatchNorm1d raises for N == 1 in training mode.
        raise ValueError("MLP with batch_norm=True needs batch size > 1")

    mid_pad = params["w0"].shape[1]
    has_rest = params["w_rest"] is not None

    def _vspec(shape, index_map):
        return pl.BlockSpec(shape, index_map,
                            memory_space=pltpu.MemorySpace.VMEM)

    inputs = [x_pad, params["w0"]]
    in_specs = [_vspec((n_pad, in_pad), lambda l: (0, 0)),
                _vspec((in_pad, mid_pad), lambda l: (0, 0))]
    if has_rest:
        # Block l-1 holds hidden layer l's weights (layer 0 uses w0).  The
        # pipeline double-buffers this spec -> layer l+1's weights stream in
        # while layer l runs on the MXU.
        inputs.append(params["w_rest"])
        in_specs.append(_vspec((1, mid_pad, mid_pad),
                               lambda l: (jnp.maximum(l - 1, 0), 0, 0)))
    inputs.append(params["ss"])
    in_specs.append(_vspec((1, 2, mid_pad), lambda l: (l, 0, 0)))
    if has_out:
        w_out, b_out = params["out"]
        out_pad = w_out.shape[1]
        out_logical = params["out_features"]
        inputs += [w_out, b_out]
        in_specs += [_vspec((mid_pad, out_pad), lambda l: (0, 0)),
                     _vspec((1, out_pad), lambda l: (0, 0))]
    else:
        out_pad = mid_pad
        out_logical = params["intermediate_size"]

    in_bytes = sum(int(np.prod(a.shape)) * a.dtype.itemsize for a in inputs)
    out_bytes = n_pad * out_pad * 4
    # VMEM budget (sized explicitly so the same code is v7x/64MiB friendly at
    # these shapes): 2x for double-buffered blocks + bf16 h scratch + a few
    # f32-sized temporaries + headroom.
    vmem_limit = int(2 * in_bytes + 2 * out_bytes
                     + n_pad * mid_pad * (2 + 6 * 4) + (8 << 20))
    flops = 2 * n_pad * (in_pad * mid_pad
                         + (num_hidden - 1) * mid_pad * mid_pad
                         + (mid_pad * out_pad if has_out else 0))
    cost = pl.CostEstimate(flops=int(flops),
                           transcendentals=int(num_hidden * mid_pad),
                           bytes_accessed=int(in_bytes + out_bytes))

    kernel = _make_mlp_kernel(n, has_rest, has_out)
    res = pl.pallas_call(
        kernel,
        out_shape=jax.ShapeDtypeStruct((n_pad, out_pad), jnp.float32),
        grid=(num_hidden,),
        in_specs=in_specs,
        out_specs=_vspec((n_pad, out_pad), lambda l: (0, 0)),
        scratch_shapes=[pltpu.VMEM((n_pad, mid_pad), jnp.bfloat16)],
        compiler_params=pltpu.CompilerParams(
            dimension_semantics=("arbitrary",),   # layer l+1 depends on layer l
            vmem_limit_bytes=vmem_limit),
        cost_estimate=cost,
    )(*inputs)
    # Strip batch / feature padding.
    return res[:n, :out_logical]

    # TODO(synk): dropout>0 (nn.Dropout) not implemented since default is 0.0.


# ---------------------------------------------------------------------------
# Pure-JAX reference (f32 epilogue, same bf16-stored weights) for a sanity check
# ---------------------------------------------------------------------------
def mlp_reference(x, params):
    h = x.reshape(x.shape[0], -1).astype(jnp.float32)
    L = params["num_hidden_layers"]
    inter = params["intermediate_size"]
    inf = params["in_features"]
    for l in range(L):
        if l == 0:
            w = params["w0"][:inf, :inter].astype(jnp.float32)
        else:
            w = params["w_rest"][l - 1, :inter, :inter].astype(jnp.float32)
        y = h @ w
        mean = y.mean(0, keepdims=True)
        var = ((y - mean) ** 2).mean(0, keepdims=True)
        gamma = params["ss"][l, 0, :inter]
        beta = params["ss"][l, 1, :inter]
        y = (y - mean) * jax.lax.rsqrt(var + BN_EPS) * gamma + beta
        h = jnp.where(y > 0, y, NEG_SLOPE * y)
    if params["out"] is not None:
        fan_in = inter if L > 0 else inf
        w, b = params["out"]
        h = h @ w[:fan_in, :params["out_features"]].astype(jnp.float32) \
            + b[:, :params["out_features"]]
    return h


# ---------------------------------------------------------------------------
if __name__ == "__main__":
    key = jax.random.PRNGKey(0)
    kx, kp = jax.random.split(key)

    # Small shapes consistent with the module: NCHW input flattened by Flatten.
    batch, C, H, W = 2, 4, 16, 16
    in_features = C * H * W          # 1024
    intermediate_size = 32
    out_features = 8
    num_hidden_layers = 2

    x = jax.random.normal(kx, (batch, C, H, W), jnp.float32)
    params = init_mlp_params(kp, in_features, intermediate_size,
                             out_features, num_hidden_layers, bias=True)

    out = mlp_forward(x, params)
    jax.block_until_ready(out)
    assert out.shape == (batch, out_features), out.shape
    assert bool(jnp.all(jnp.isfinite(out)))

    ref = mlp_reference(x, params)
    max_err = float(jnp.max(jnp.abs(out - ref)))
    assert max_err < 0.1, f"mismatch vs reference: {max_err}"

    print("KERNEL_OK")
</pallas_src>

<mosaic_0001>
module attributes {stable_mosaic.version = 11 : i64} {
  func.func @kernel(%arg0: i32, %arg1: memref<8x1024xbf16, #tpu.memory_space<vmem>>, %arg2: memref<1024x128xbf16, #tpu.memory_space<vmem>>, %arg3: memref<1x128x128xbf16, #tpu.memory_space<vmem>>, %arg4: memref<1x2x128xf32, #tpu.memory_space<vmem>>, %arg5: memref<128x128xbf16, #tpu.memory_space<vmem>>, %arg6: memref<1x128xf32, #tpu.memory_space<vmem>>, %arg7: memref<8x128xf32, #tpu.memory_space<vmem>>, %arg8: memref<8x128xbf16, #tpu.memory_space<vmem>>) attributes {dimension_semantics = [#tpu.dimension_semantics<arbitrary>], iteration_bounds = array<i64: 2>, scalar_prefetch = 0 : i64, scratch_operands = 1 : i64, tpu.core_type = #tpu.core_type<tc>, window_params = [{pipeline_mode = #tpu.pipeline_mode<synchronous>, transform_indices = @transform_0, window_bounds = array<i64: 8, 1024>}, {pipeline_mode = #tpu.pipeline_mode<synchronous>, transform_indices = @transform_1, window_bounds = array<i64: 1024, 128>}, {transform_indices = @transform_2, window_bounds = array<i64: 1, 128, 128>}, {transform_indices = @transform_3, window_bounds = array<i64: 1, 2, 128>}, {pipeline_mode = #tpu.pipeline_mode<synchronous>, transform_indices = @transform_4, window_bounds = array<i64: 128, 128>}, {pipeline_mode = #tpu.pipeline_mode<synchronous>, transform_indices = @transform_5, window_bounds = array<i64: 1, 128>}, {pipeline_mode = #tpu.pipeline_mode<synchronous>, transform_indices = @transform_6, window_bounds = array<i64: 8, 128>}]} {
    %0 = tpu.iota {dimensions = array<i32: 0>} : vector<8x1xi32>
    %c2_i32 = arith.constant 2 : i32
    %1 = vector.broadcast %c2_i32 : i32 to vector<8x1xi32>
    %2 = arith.cmpi slt, %0, %1 : vector<8x1xi32>
    %3 = arith.extui %2 : vector<8x1xi1> to vector<8x1xi32>
    %4 = arith.sitofp %3 : vector<8x1xi32> to vector<8x1xf32>
    %c0_i32 = arith.constant 0 : i32
    %5 = arith.cmpi eq, %arg0, %c0_i32 : i32
    %6 = arith.extui %5 : i1 to i32
    %cst = arith.constant 5.000000e-01 : f32
    %c0_i32_0 = arith.constant 0 : i32
    %7 = arith.cmpi ne, %6, %c0_i32_0 : i32
    scf.if %7 {
      %c0 = arith.constant 0 : index
      %c0_5 = arith.constant 0 : index
      %14 = vector.load %arg1[%c0, %c0_5] : memref<8x1024xbf16, #tpu.memory_space<vmem>>, vector<8x1024xbf16>
      %c0_6 = arith.constant 0 : index
      %c0_7 = arith.constant 0 : index
      %15 = vector.load %arg2[%c0_6, %c0_7] : memref<1024x128xbf16, #tpu.memory_space<vmem>>, vector<1024x128xbf16>
      %cst_8 = arith.constant dense<0.000000e+00> : vector<8x128xf32>
      %16 = tpu.matmul %14, %15, %cst_8 {dimension_numbers = #tpu.dot_dimension_numbers<[1], [0], [0], [1], [0, 0, 1, 1], [], []>} : vector<8x1024xbf16>, vector<1024x128xbf16>, vector<8x128xf32> -> vector<8x128xf32>
      %cst_9 = arith.constant dense<0.000000e+00> : vector<128xf32>
      %17 = vector.multi_reduction <add>, %16, %cst_9 [0] : vector<8x128xf32> to vector<128xf32>
      %18 = vector.shape_cast %17 : vector<128xf32> to vector<1x128xf32>
      %19 = vector.broadcast %cst : f32 to vector<1x128xf32>
      %20 = arith.mulf %18, %19 : vector<1x128xf32>
      %21 = arith.mulf %16, %16 : vector<8x128xf32>
      %cst_10 = arith.constant dense<0.000000e+00> : vector<128xf32>
      %22 = vector.multi_reduction <add>, %21, %cst_10 [0] : vector<8x128xf32> to vector<128xf32>
      %23 = vector.shape_cast %22 : vector<128xf32> to vector<1x128xf32>
      %24 = vector.broadcast %cst : f32 to vector<1x128xf32>
      %25 = arith.mulf %23, %24 : vector<1x128xf32>
      %26 = arith.mulf %20, %20 : vector<1x128xf32>
      %27 = arith.subf %25, %26 : vector<1x128xf32>
      %cst_11 = arith.constant 0.000000e+00 : f32
      %28 = vector.broadcast %cst_11 : f32 to vector<1x128xf32>
      %29 = arith.maximumf %27, %28 : vector<1x128xf32>
      %c0_12 = arith.constant 0 : index
      %c0_13 = arith.constant 0 : index
      %c0_14 = arith.constant 0 : index
      %30 = vector.load %arg4[%c0_12, %c0_13, %c0_14] : memref<1x2x128xf32, #tpu.memory_space<vmem>>, vector<1x2x128xf32>
      %31 = vector.shape_cast %30 : vector<1x2x128xf32> to vector<2x128xf32>
      %32 = vector.extract_strided_slice %31 {offsets = [0, 0], sizes = [1, 128], strides = [1, 1]} : vector<2x128xf32> to vector<1x128xf32>
      %33 = vector.extract_strided_slice %31 {offsets = [1, 0], sizes = [1, 128], strides = [1, 1]} : vector<2x128xf32> to vector<1x128xf32>
      %cst_15 = arith.constant 9.99999974E-6 : f32
      %34 = vector.broadcast %cst_15 : f32 to vector<1x128xf32>
      %35 = arith.addf %29, %34 : vector<1x128xf32>
      %36 = math.rsqrt %35 : vector<1x128xf32>
      %37 = arith.mulf %32, %36 : vector<1x128xf32>
      %38 = arith.mulf %20, %37 : vector<1x128xf32>
      %39 = arith.subf %33, %38 : vector<1x128xf32>
      %40 = vector.broadcast %37 : vector<1x128xf32> to vector<8x128xf32>
      %41 = arith.mulf %16, %40 : vector<8x128xf32>
      %42 = vector.broadcast %39 : vector<1x128xf32> to vector<8x128xf32>
      %43 = arith.addf %41, %42 : vector<8x128xf32>
      %cst_16 = arith.constant 0.000000e+00 : f32
      %44 = vector.broadcast %cst_16 : f32 to vector<8x128xf32>
      %45 = arith.cmpf ogt, %43, %44 : vector<8x128xf32>
      %cst_17 = arith.constant 0.00999999977 : f32
      %46 = vector.broadcast %cst_17 : f32 to vector<8x128xf32>
      %47 = arith.mulf %46, %43 : vector<8x128xf32>
      %48 = arith.select %45, %43, %47 : vector<8x128xi1>, vector<8x128xf32>
      %49 = vector.broadcast %4 : vector<8x1xf32> to vector<8x128xf32>
      %50 = arith.mulf %48, %49 : vector<8x128xf32>
      %51 = arith.truncf %50 : vector<8x128xf32> to vector<8x128xbf16>
      %c0_18 = arith.constant 0 : index
      %c0_19 = arith.constant 0 : index
      %52 = vector.load %arg8[%c0_18, %c0_19] : memref<8x128xbf16, #tpu.memory_space<vmem>>, vector<8x128xbf16>
      tpu.vector_store %arg8[%c0_18, %c0_19], %51 {strides = array<i32>} : memref<8x128xbf16, #tpu.memory_space<vmem>>, vector<8x128xbf16>,
    } else {
    }
    %c0_i32_1 = arith.constant 0 : i32
    %8 = arith.cmpi sgt, %arg0, %c0_i32_1 : i32
    %9 = arith.extui %8 : i1 to i32
    %cst_2 = arith.constant 5.000000e-01 : f32
    %c0_i32_3 = arith.constant 0 : i32
    %10 = arith.cmpi ne, %9, %c0_i32_3 : i32
    scf.if %10 {
      %c0 = arith.constant 0 : index
      %c0_5 = arith.constant 0 : index
      %14 = vector.load %arg8[%c0, %c0_5] : memref<8x128xbf16, #tpu.memory_space<vmem>>, vector<8x128xbf16>
      %c0_6 = arith.constant 0 : index
      %c0_7 = arith.constant 0 : index
      %c0_8 = arith.constant 0 : index
      %15 = vector.load %arg3[%c0_6, %c0_7, %c0_8] : memref<1x128x128xbf16, #tpu.memory_space<vmem>>, vector<1x128x128xbf16>
      %16 = vector.shape_cast %15 : vector<1x128x128xbf16> to vector<128x128xbf16>
      %cst_9 = arith.constant dense<0.000000e+00> : vector<8x128xf32>
      %17 = tpu.matmul %14, %16, %cst_9 {dimension_numbers = #tpu.dot_dimension_numbers<[1], [0], [0], [1], [0, 0, 1, 1], [], []>} : vector<8x128xbf16>, vector<128x128xbf16>, vector<8x128xf32> -> vector<8x128xf32>
      %cst_10 = arith.constant dense<0.000000e+00> : vector<128xf32>
      %18 = vector.multi_reduction <add>, %17, %cst_10 [0] : vector<8x128xf32> to vector<128xf32>
      %19 = vector.shape_cast %18 : vector<128xf32> to vector<1x128xf32>
      %20 = vector.broadcast %cst_2 : f32 to vector<1x128xf32>
      %21 = arith.mulf %19, %20 : vector<1x128xf32>
      %22 = arith.mulf %17, %17 : vector<8x128xf32>
      %cst_11 = arith.constant dense<0.000000e+00> : vector<128xf32>
      %23 = vector.multi_reduction <add>, %22, %cst_11 [0] : vector<8x128xf32> to vector<128xf32>
      %24 = vector.shape_cast %23 : vector<128xf32> to vector<1x128xf32>
      %25 = vector.broadcast %cst_2 : f32 to vector<1x128xf32>
      %26 = arith.mulf %24, %25 : vector<1x128xf32>
      %27 = arith.mulf %21, %21 : vector<1x128xf32>
      %28 = arith.subf %26, %27 : vector<1x128xf32>
      %cst_12 = arith.constant 0.000000e+00 : f32
      %29 = vector.broadcast %cst_12 : f32 to vector<1x128xf32>
      %30 = arith.maximumf %28, %29 : vector<1x128xf32>
      %c0_13 = arith.constant 0 : index
      %c0_14 = arith.constant 0 : index
      %c0_15 = arith.constant 0 : index
      %31 = vector.load %arg4[%c0_13, %c0_14, %c0_15] : memref<1x2x128xf32, #tpu.memory_space<vmem>>, vector<1x2x128xf32>
      %32 = vector.shape_cast %31 : vector<1x2x128xf32> to vector<2x128xf32>
      %33 = vector.extract_strided_slice %32 {offsets = [0, 0], sizes = [1, 128], strides = [1, 1]} : vector<2x128xf32> to vector<1x128xf32>
      %34 = vector.extract_strided_slice %32 {offsets = [1, 0], sizes = [1, 128], strides = [1, 1]} : vector<2x128xf32> to vector<1x128xf32>
      %cst_16 = arith.constant 9.99999974E-6 : f32
      %35 = vector.broadcast %cst_16 : f32 to vector<1x128xf32>
      %36 = arith.addf %30, %35 : vector<1x128xf32>
      %37 = math.rsqrt %36 : vector<1x128xf32>
      %38 = arith.mulf %33, %37 : vector<1x128xf32>
      %39 = arith.mulf %21, %38 : vector<1x128xf32>
      %40 = arith.subf %34, %39 : vector<1x128xf32>
      %41 = vector.broadcast %38 : vector<1x128xf32> to vector<8x128xf32>
      %42 = arith.mulf %17, %41 : vector<8x128xf32>
      %43 = vector.broadcast %40 : vector<1x128xf32> to vector<8x128xf32>
      %44 = arith.addf %42, %43 : vector<8x128xf32>
      %cst_17 = arith.constant 0.000000e+00 : f32
      %45 = vector.broadcast %cst_17 : f32 to vector<8x128xf32>
      %46 = arith.cmpf ogt, %44, %45 : vector<8x128xf32>
      %cst_18 = arith.constant 0.00999999977 : f32
      %47 = vector.broadcast %cst_18 : f32 to vector<8x128xf32>
      %48 = arith.mulf %47, %44 : vector<8x128xf32>
      %49 = arith.select %46, %44, %48 : vector<8x128xi1>, vector<8x128xf32>
      %50 = vector.broadcast %4 : vector<8x1xf32> to vector<8x128xf32>
      %51 = arith.mulf %49, %50 : vector<8x128xf32>
      %52 = arith.truncf %51 : vector<8x128xf32> to vector<8x128xbf16>
      %c0_19 = arith.constant 0 : index
      %c0_20 = arith.constant 0 : index
      %53 = vector.load %arg8[%c0_19, %c0_20] : memref<8x128xbf16, #tpu.memory_space<vmem>>, vector<8x128xbf16>
      tpu.vector_store %arg8[%c0_19, %c0_20], %52 {strides = array<i32>} : memref<8x128xbf16, #tpu.memory_space<vmem>>, vector<8x128xbf16>,
    } else {
    }
    %c1_i32 = arith.constant 1 : i32
    %11 = arith.cmpi eq, %arg0, %c1_i32 : i32
    %12 = arith.extui %11 : i1 to i32
    %c0_i32_4 = arith.constant 0 : i32
    %13 = arith.cmpi ne, %12, %c0_i32_4 : i32
    scf.if %13 {
      %c0 = arith.constant 0 : index
      %c0_5 = arith.constant 0 : index
      %14 = vector.load %arg8[%c0, %c0_5] : memref<8x128xbf16, #tpu.memory_space<vmem>>, vector<8x128xbf16>
      %c0_6 = arith.constant 0 : index
      %c0_7 = arith.constant 0 : index
      %15 = vector.load %arg5[%c0_6, %c0_7] : memref<128x128xbf16, #tpu.memory_space<vmem>>, vector<128x128xbf16>
      %cst_8 = arith.constant dense<0.000000e+00> : vector<8x128xf32>
      %16 = tpu.matmul %14, %15, %cst_8 {dimension_numbers = #tpu.dot_dimension_numbers<[1], [0], [0], [1], [0, 0, 1, 1], [], []>} : vector<8x128xbf16>, vector<128x128xbf16>, vector<8x128xf32> -> vector<8x128xf32>
      %c0_9 = arith.constant 0 : index
      %c0_10 = arith.constant 0 : index
      %17 = vector.load %arg6[%c0_9, %c0_10] : memref<1x128xf32, #tpu.memory_space<vmem>>, vector<1x128xf32>
      %18 = vector.broadcast %17 : vector<1x128xf32> to vector<8x128xf32>
      %19 = arith.addf %16, %18 : vector<8x128xf32>
      %c0_11 = arith.constant 0 : index
      %c0_12 = arith.constant 0 : index
      %20 = vector.load %arg7[%c0_11, %c0_12] : memref<8x128xf32, #tpu.memory_space<vmem>>, vector<8x128xf32>
      tpu.vector_store %arg7[%c0_11, %c0_12], %19 {strides = array<i32>} : memref<8x128xf32, #tpu.memory_space<vmem>>, vector<8x128xf32>,
    } else {
    }
    return
  }
  func.func @transform_0(%arg0: i32) -> (i32, i32) {
    %c0_i32 = arith.constant 0 : i32
    %c0_i32_0 = arith.constant 0 : i32
    %c0_i32_1 = arith.constant 0 : i32
    return %c0_i32, %c0_i32_0 : i32, i32
  }
  func.func @transform_1(%arg0: i32) -> (i32, i32) {
    %c0_i32 = arith.constant 0 : i32
    %c0_i32_0 = arith.constant 0 : i32
    %c0_i32_1 = arith.constant 0 : i32
    return %c0_i32, %c0_i32_0 : i32, i32
  }
  func.func @transform_2(%arg0: i32) -> (i32, i32, i32) {
    %c1_i32 = arith.constant 1 : i32
    %0 = arith.subi %arg0, %c1_i32 : i32
    %c0_i32 = arith.constant 0 : i32
    %1 = arith.maxsi %0, %c0_i32 : i32
    %c0_i32_0 = arith.constant 0 : i32
    %c0_i32_1 = arith.constant 0 : i32
    %c0_i32_2 = arith.constant 0 : i32
    return %1, %c0_i32_0, %c0_i32_1 : i32, i32, i32
  }
  func.func @transform_3(%arg0: i32) -> (i32, i32, i32) {
    %c0_i32 = arith.constant 0 : i32
    %c0_i32_0 = arith.constant 0 : i32
    %c0_i32_1 = arith.constant 0 : i32
    return %arg0, %c0_i32, %c0_i32_0 : i32, i32, i32
  }
  func.func @transform_4(%arg0: i32) -> (i32, i32) {
    %c0_i32 = arith.constant 0 : i32
    %c0_i32_0 = arith.constant 0 : i32
    %c0_i32_1 = arith.constant 0 : i32
    return %c0_i32, %c0_i32_0 : i32, i32
  }
  func.func @transform_5(%arg0: i32) -> (i32, i32) {
    %c0_i32 = arith.constant 0 : i32
    %c0_i32_0 = arith.constant 0 : i32
    %c0_i32_1 = arith.constant 0 : i32
    return %c0_i32, %c0_i32_0 : i32, i32
  }
  func.func @transform_6(%arg0: i32) -> (i32, i32) {
    %c0_i32 = arith.constant 0 : i32
    %c0_i32_0 = arith.constant 0 : i32
    %c0_i32_1 = arith.constant 0 : i32
    return %c0_i32, %c0_i32_0 : i32, i32
  }
}

</mosaic_0001>

<bundles_post_ra>
// kernel: tpu_custom_call.1
= control target key start
LH: loop header
LB: loop body
LE: loop exit
PB: predicated region body
PF: predicated region fallthrough
CT: control target
= control target key end

     0   :  { %s2469_s0 = inlined_call_operand.hbm [shape: bf16[8,1024], index: 0, kind: input, shape index: {}]   ;;  %s2470_s1 = inlined_call_operand.hbm [shape: bf16[1024,128], index: 1, kind: input, shape index: {}]   ;;  %s2471_s2 = inlined_call_operand.hbm [shape: bf16[1,128,128], index: 2, kind: input, shape index: {}]   ;;  %s2472_s3 = inlined_call_operand.hbm [shape: f32[2,2,128], index: 3, kind: input, shape index: {}]   ;;  %s2473_s4 = inlined_call_operand.hbm [shape: bf16[128,128], index: 4, kind: input, shape index: {}]   ;;  %s2474_s5 = inlined_call_operand.vmem [shape: f32[1,128], index: 5, kind: input, shape index: {}]   ;;  %s2475_s6 = inlined_call_operand.hbm [shape: f32[8,128], index: 6, kind: output, shape index: {}]  }
   0x1   :  { %2481 = sst [smem:[#allocation18_spill]] %s2469_s0 }
   0x2   :  { %2482 = sst [smem:[#allocation19_spill]] %s2470_s1 }
   0x3   :  { %2483 = sst [smem:[#allocation20_spill]] %s2474_s5 }
   0x4   :  { %2484 = sst [smem:[#allocation21_spill]] %s2475_s6 }
   0x5   :  { %11 = vsyncpa [#allocation4], 0 }
   0x6   :  { %12 = vsyncpa [#allocation7], 0 }
   0x7   :  { %13 = vsyncpa [#allocation5], 0  ;;  %s2221_s21 = smov 0   ;;  %s2223_s22 = smov 0  }
   0x8   :  { %s2225_s23 = smov 0   ;;  %s2227_s24 = smov 0  }
   0x9   :  { %s2229_s25 = smov 0   ;;  %s2231_s26 = smov 0  }
   0xa   :  { %s2233_s27 = smov 0  }
   0xb LB: > { %s2255_s28 = sadd.s32 4294967295, %s2177_s27   ;;  %p87_p0 = scmp.ne.s32.totalorder %s2169_s25, %s2165_s24  ;;  %s2177_s27 = sphi %s2233_s27, %s2506_s27   ;;  %s2173_s26 = sphi %s2231_s26, %s2505_s26   ;;  %s2169_s25 = sphi %s2229_s25, %s2504_s25   ;;  %s2165_s24 = sphi %s2227_s24, %s2503_s24   ;;  %s2161_s23 = sphi %s2225_s23, %s2502_s23   ;;  %s2157_s22 = sphi %s2223_s22, %s2501_s22   ;;  %s2153_s21 = sphi %s2221_s21, %s2500_s21  }
   0xc   : > { %p88_p1 = scmp.eq.s32.totalorder %s2255_s28, 0  ;;  %p1381_p2 = scmp.ge.s32.totalorder %s2177_s27, 1 }
   0xd   : > { %p187_p3 = scmp.lt.s32.totalorder %s2177_s27, 3  ;;  %s2486_s0 = sld [smem:[#allocation18_spill]] }
   0xe   : > { %p2264_p5 = por %p88_p1, %p87_p0  ;;  %s2179_s10 = smov [#allocation3]  }
   0xf   : > { %p2271_p6 = pnand %p1381_p2, %p187_p3  ;;  %s201_s11 = sshll.u32 %s2179_s10, 4  ;;  %s202_s11 = int_to_ptr.vmem [resolvable:$true] %s201_s11 }
  0x10   : > { %s2488_s1 = sld [smem:[#allocation19_spill]]  ;;  %s2180_s16 = smov [#allocation6]  }
  0x11   : > { %p1827_p7 = pneg %p2271_p6  ;;  %s212_s17 = sshll.u32 %s2180_s16, 4  ;;  %s213_s17 = int_to_ptr.vmem [resolvable:$true] %s212_s17 }
  0x12   : > { %s2476_s18 = smov 64   ;;  %s2478_s19 = smov 4  }
  0x13   : > { %s199_s8 = sshll.u32 %s2486_s0, 4  ;;  %p2282_p8 = pnand %p1827_p7, %p88_p1  ;;  %s200_s8 = int_to_ptr.hbm [resolvable:$true] %s199_s8 }
  0x14   : > { %s2294_s20 = sadd.s32 1, %s2177_s27   ;;  %p66_p9 = scmp.gt.s32.totalorder %s2255_s28, 0 }
  0x15   : > { %1830 = dma.hbm_to_vmem [thread:$0]  (!%p2282_p8), %s200_s8, 512, %s202_s11, [#allocation4]  }
  0x16   : > { %s210_s14 = sshll.u32 %s2488_s1, 4  ;;  %s1380_s24 = sadd.s32 4294967295, %s2294_s20  ;;  %s211_s14 = int_to_ptr.hbm [resolvable:$true] %s210_s14 }
  0x17   : > { %1833 = dma.hbm_to_vmem [thread:$0]  (!%p2282_p8), %s211_s14, 8192, %s213_s17, [#allocation7], %s2476_s18, %s2476_s18, %s2478_s19  }
  0x18   : > { %s74_s30 = sadd.s32 1, %s2173_s26  ;;  %p69_p10 = scmp.gt.s32.totalorder %s1380_s24, 0 }
  0x19   : > { %s67_s7 = scalar_select %p66_p9, %s2255_s28, 0 }
  0x1a   : > { %p81_p11 = scmp.ne.s32.totalorder %s2173_s26, %s2169_s25  ;;  %p82_p12 = scmp.eq.s32.totalorder %s2177_s27, 0 }
  0x1b   : > { %p2480_p13 = scmp.lt.s32.totalorder %s2177_s27, 2  ;;  %s2508_s24 = smov (!%p69_p10, %s1380_s24), 0 }
  0x1c   : > { %p2306_p0 = por %p82_p12, %p81_p11  ;;  %s243_s10 = sand.u32 1, %s2177_s27  }
  0x1d   : > { %s71_s11 = ssub.s32 %s67_s7, %s2508_s24  ;;  %s245_s12 = sand.u32 1, %s2173_s26  }
  0x1e   : > { %p72_p2 = scmp.eq.s32.totalorder %s71_s11, 0  ;;  %s1386_s13 = sshll.u32 %s245_s12, 6 }
  0x1f   : > { %s1726_s14 = sshll.u32 %s67_s7, 6  ;;  %s247_s1 = scalar_lea.vmem [#allocation8], %s1386_s13 }
  0x20   : > { %s2313_s16 = scalar_select %p72_p2, %s2173_s26, %s74_s30  }
  0x21   : > { %s255_s19 = scalar_lea.hbm %s2471_s2, %s1726_s14  ;;  %s258_s6 = sshll.u32 %s247_s1, 4  ;;  %s259_s6 = int_to_ptr.vmem [resolvable:$true] %s258_s6 }
  0x22   : > { %s256_s0 = sshll.u32 %s255_s19, 4  ;;  %p2322_p3 = pnand %p2480_p13, %p2306_p0  ;;  %s257_s0 = int_to_ptr.hbm [resolvable:$true] %s256_s0 }
  0x23   : > { %s224_s30 = sshll.u32 %s2473_s4, 4  ;;  %s2183_s7 = smov [#allocation10]   ;;  %s225_s30 = int_to_ptr.hbm [resolvable:$true] %s224_s30 }
  0x24   : > { %s226_s18 = sshll.u32 %s2183_s7, 4  ;;  %s2329_s12 = scalar_lea.sflag [#allocation4], %s243_s10  ;;  %s227_s18 = int_to_ptr.vmem [resolvable:$true] %s226_s18 }
  0x25   : > { %s1981_s19 = sshra.s32 %s257_s0, 4  ;;  %p1985_p9 = pneg %p2322_p3  ;;  %s1982_s19 = int_to_ptr.hbm [resolvable:$true] %s1981_s19 }
  0x26   : > { %s1983_s1 = scalar_lea.hbm %s1982_s19, 64  ;;  %s1988_s14 = scalar_lea.hbm %s2471_s2, 64 }
  0x27   : > { %p1984_p7 = scmp.ne.s32.totalorder %s1982_s19, %s1983_s1  ;;  %p1989_p0 = scmp.lt.s32.totalorder %s1982_s19, %s2471_s2 }
  0x28   : > { %p1990_p2 = scmp.lt.s32.totalorder %s1988_s14, %s1983_s1 }
  0x29   : > { %p1986_p10 = pnand %p1985_p9, %p1984_p7 }
  0x2a   : > { %p1991_p4 = por %p1990_p2, %p1989_p0 }
  0x2b   : > { %p1987_p11 = pneg %p1986_p10 }
  0x2d   : > { %p1992_p13 = pnand %p1991_p4, %p1987_p11 }
  0x2f   : > { %1995 = shalt.err (!%p1992_p13)
}
  0x30   : > { %s2492_s10 = smov 4   ;;  %s2493_s11 = smov 64  }
  0x31   : > { %1840 = dma.hbm_to_vmem [thread:$0]  (!%p2322_p3), %s257_s0, 1024, %s259_s6, %s2329_s12, %s2493_s11, %s2493_s11, %s2492_s10  }
  0x32   : > { %1836 = dma.hbm_to_vmem [thread:$0]  (!%p2282_p8), %s225_s30, 1024, %s227_s18, [#allocation7], %s2493_s11, %s2493_s11, %s2492_s10  }
  0x33   : > { %s97_s5 = ssub.s32 %s2177_s27, %s2294_s20  ;;  %s100_s7 = sadd.s32 1, %s2161_s23 }
  0x34   : > { %p98_p4 = scmp.eq.s32.totalorder %s97_s5, 0  ;;  %p107_p13 = scmp.ne.s32.totalorder %s2161_s23, %s2157_s22 }
  0x35   : > { %p113_p7 = scmp.ne.s32.totalorder %s2157_s22, %s2153_s21  ;;  %s270_s0 = sand.u32 1, %s2161_s23  }
  0x36   : > { %s2358_s19 = scalar_select %p98_p4, %s2161_s23, %s100_s7  }
  0x37   : > { %p109_p9 = por %p107_p13, %p82_p12  ;;  %p2364_p10 = por %p113_p7, %p88_p1 }
  0x38   : > { %s1391_s6 = sshll.u32 %s2177_s27, 1  ;;  %s1390_s15 = sshll.u32 %s270_s0, 1 }
  0x39   : > { %s276_s18 = scalar_lea.hbm %s2472_s3, %s1391_s6  ;;  %s272_s14 = scalar_lea.vmem [#allocation9], %s1390_s15 }
  0x3a   : > { %s278_s13 = sshll.u32 %s276_s18, 4  ;;  %s280_s21 = sshll.u32 %s272_s14, 4  ;;  %s279_s13 = int_to_ptr.hbm [resolvable:$true] %s278_s13  ;;  %s281_s21 = int_to_ptr.vmem [resolvable:$true] %s280_s21 }
  0x3b   : > { %p2495_p8 = scmp.lt.s32.totalorder %s2177_s27, 2  ;;  %s2041_s24 = sshra.s32 %s279_s13, 4  ;;  %s2042_s24 = int_to_ptr.hbm [resolvable:$true] %s2041_s24 }
  0x3c   : > { %s2043_s10 = scalar_lea.hbm %s2042_s24, 2  ;;  %s2048_s7 = scalar_lea.hbm %s2472_s3, 4 }
  0x3d   : > { %p2375_p3 = pnand %p2495_p8, %p109_p9  ;;  %p2044_p12 = scmp.ne.s32.totalorder %s2042_s24, %s2043_s10 }
  0x3e   : > { %p2049_p4 = scmp.lt.s32.totalorder %s2042_s24, %s2472_s3  ;;  %p2050_p13 = scmp.lt.s32.totalorder %s2048_s7, %s2043_s10 }
  0x3f   : > { %p2045_p11 = pneg %p2375_p3 }
  0x40   : > { %p2051_p7 = por %p2050_p13, %p2049_p4 }
  0x41   : > { %p2046_p0 = pnand %p2045_p11, %p2044_p12 }
  0x43   : > { %p2047_p2 = pneg %p2046_p0 }
  0x45   : > { %p2052_p9 = pnand %p2051_p7, %p2047_p2 }
  0x47   : > { %2055 = shalt.err (!%p2052_p9)
}
  0x48   : > { %1843 = dma.hbm_to_vmem [thread:$0]  (!%p2375_p3), %s279_s13, 32, %s281_s21, %s2329_s12  }
  0x49   : > { %289 = sbr.rel (%p2271_p6) target bundleno = 769 (0x301), region = 44 }
  0x4e   : > { %2128 = dma.done.wait (%p88_p1), [#allocation4], 512  }
  0x4f   : > { %2130 = vsyncadd (%p88_p1), [#allocation4], 4294966784 }
  0x50   : > { %2132 = dma.done.wait (%p88_p1), [#allocation7], 8192  }
  0x51   : > { %2134 = vsyncadd (%p88_p1), [#allocation7], 4294959104  ;;  %s301_s27 = sand.u32 1, %s2255_s28   ;;  %s303_s12 = sand.u32 1, %s2169_s25  }
  0x52   : > { %s1395_s15 = sshll.u32 %s303_s12, 6  ;;  %s302_s9 = scalar_lea.sflag [#allocation4], %s301_s27 }
  0x53   : > { %s2402_s8 = scalar_lea.vmem [#allocation8], %s1395_s15 }
  0x54   : > { %2136 = dma.done.wait (%p2264_p5), %s302_s9, 1024  }
  0x55   : > { %2138 = vsyncadd (%p2264_p5), %s302_s9, 4294966272  ;;  %s313_s30 = sand.u32 1, %s2157_s22  }
  0x56   : > { %s2409_s18 = sshll.u32 %s313_s30, 1 }
  0x57   : > { %s315_s13 = scalar_lea.vmem [#allocation9], %s2409_s18 }
  0x58   : > { %2140 = dma.done.wait (%p2364_p10), %s302_s9, 32  }
  0x59   : > { %2142 = vsyncadd (%p2364_p10), %s302_s9, 4294967264 }
  0x5a   : > { %2144 = dma.done.wait (%p88_p1), [#allocation7], 1024  }
  0x5b   : > { %2146 = vsyncadd (%p88_p1), [#allocation7], 4294966272  ;;  %v353_v0 = vlaneseq  ;;  %v2184_v2 = vmov 0.0   ;;  %p2497_p5 = scmp.ne.s32.totalorder %s2255_s28, 0 }
  0x5d   : > { %v354_v1 = vshrl.u32 %v353_v0, 7  ;;  %361 = sbr.rel (%p2497_p5) target bundleno = 360 (0x168), region = 68 }
  0x5f   : > { %vm355_vm0 = vcmp.lt.s32.totalorder %v354_v1, 2 }
  0x60   : > { %v2420_v3 = vsel %vm355_vm0, 1.0, %v2184_v2 }
  0x62   : > { %v1734_v4 = vld [vmem:[#allocation6 + $0x38] sm:$0xff]  ;;  %v1733_v8 = vld [vmem:[#allocation6 + $0x30] sm:$0xff]  ;;  %v1732_v12 = vld [vmem:[#allocation6 + $0x28] sm:$0xff] }
  0x63   : > { %v1742_v5 = vld [vmem:[#allocation6 + $0x78] sm:$0xff]  ;;  %906 = vmatpush.bf16.msra.mxu0 %v1734_v4  ;;  %v1741_v9 = vld [vmem:[#allocation6 + $0x70] sm:$0xff]  ;;  %v1740_v13 = vld [vmem:[#allocation6 + $0x68] sm:$0xff] }
  0x64   : > { %v1750_v6 = vld [vmem:[#allocation6 + $0xb8] sm:$0xff]  ;;  %919 = vmatpush.bf16.msra.mxu1 %v1742_v5  ;;  %v1749_v10 = vld [vmem:[#allocation6 + $0xb0] sm:$0xff]  ;;  %v1748_v14 = vld [vmem:[#allocation6 + $0xa8] sm:$0xff] }
  0x65   : > { %v1758_v7 = vld [vmem:[#allocation6 + $0xf8] sm:$0xff]  ;;  %932 = vmatpush.bf16.msra.mxu2 %v1750_v6  ;;  %v1757_v11 = vld [vmem:[#allocation6 + $0xf0] sm:$0xff]  ;;  %v1756_v15 = vld [vmem:[#allocation6 + $0xe8] sm:$0xff] }
  0x66   : > { %945 = vmatpush.bf16.msra.mxu3 %v1758_v7  ;;  %v1731_v16 = vld [vmem:[#allocation6 + $0x20] sm:$0xff]  ;;  %v1730_v20 = vld [vmem:[#allocation6 + $0x18] sm:$0xff]  ;;  %v1729_v24 = vld [vmem:[#allocation6 + $0x10] sm:$0xff] }
  0x67   : > { %907 = vmatpush.bf16.msra.mxu0 %v1733_v8  ;;  %v1739_v17 = vld [vmem:[#allocation6 + $0x60] sm:$0xff]  ;;  %v1738_v21 = vld [vmem:[#allocation6 + $0x58] sm:$0xff]  ;;  %v1737_v25 = vld [vmem:[#allocation6 + $0x50] sm:$0xff] }
  0x68   : > { %920 = vmatpush.bf16.msra.mxu1 %v1741_v9  ;;  %v1747_v18 = vld [vmem:[#allocation6 + $0xa0] sm:$0xff]  ;;  %v1746_v22 = vld [vmem:[#allocation6 + $0x98] sm:$0xff]  ;;  %v1745_v26 = vld [vmem:[#allocation6 + $0x90] sm:$0xff] }
  0x69   : > { %933 = vmatpush.bf16.msra.mxu2 %v1749_v10  ;;  %v1755_v19 = vld [vmem:[#allocation6 + $0xe0] sm:$0xff]  ;;  %v1754_v23 = vld [vmem:[#allocation6 + $0xd8] sm:$0xff]  ;;  %v1753_v27 = vld [vmem:[#allocation6 + $0xd0] sm:$0xff] }
  0x6a   : > { %946 = vmatpush.bf16.msra.mxu3 %v1757_v11  ;;  %v1728_v28 = vld [vmem:[#allocation6 + $0x8] sm:$0xff]  ;;  %v362_v33 = vld [vmem:[#allocation3] sm:$0xff]  ;;  %v1766_v42 = vld [vmem:[#allocation6 + $0x138] sm:$0xff] }
  0x6b   : > { %908 = vmatpush.bf16.msra.mxu0 %v1732_v12  ;;  %v1736_v29 = vld [vmem:[#allocation6 + $0x48] sm:$0xff]  ;;  %v1727_v34 = vld [vmem:[#allocation6] sm:$0xff]  ;;  %v498_v37 = vunpack.c.l.b16 %v362_v33  ;;  %v499_v41 = vunpack.c.h.b16 %v362_v33  ;;  %v1774_v43 = vld [vmem:[#allocation6 + $0x178] sm:$0xff] }
  0x6c   : > { %921 = vmatpush.bf16.msra.mxu1 %v1740_v13  ;;  %v1744_v30 = vld [vmem:[#allocation6 + $0x88] sm:$0xff]  ;;  %v1735_v35 = vld [vmem:[#allocation6 + $0x40] sm:$0xff]  ;;  %v1782_v44 = vld [vmem:[#allocation6 + $0x1b8] sm:$0xff] }
  0x6d   : > { %934 = vmatpush.bf16.msra.mxu2 %v1748_v14  ;;  %v1752_v31 = vld [vmem:[#allocation6 + $0xc8] sm:$0xff]  ;;  %v1743_v38 = vld [vmem:[#allocation6 + $0x80] sm:$0xff]  ;;  %v1790_v45 = vld [vmem:[#allocation6 + $0x1f8] sm:$0xff]  ;;  %v506_v47 = vpack.c.b16 %v498_v37, %v498_v37  ;;  %v507_v49 = vpack.c.b16 %v499_v41, %v499_v41 }
  0x6e   : > { %947 = vmatpush.bf16.msra.mxu3 %v1756_v15  ;;  %v363_v32 = vld [vmem:[#allocation3 + $0x8] sm:$0xff]  ;;  %v1751_v39 = vld [vmem:[#allocation6 + $0xc0] sm:$0xff]  ;;  %v1765_v50 = vld [vmem:[#allocation6 + $0x130] sm:$0xff] }
  0x6f   : > { %909 = vmatpush.bf16.msra.mxu0 %v1731_v16  ;;  %v500_v36 = vunpack.c.l.b16 %v363_v32  ;;  %v501_v40 = vunpack.c.h.b16 %v363_v32  ;;  %v1773_v51 = vld [vmem:[#allocation6 + $0x170] sm:$0xff]  ;;  %v1764_v54 = vld [vmem:[#allocation6 + $0x128] sm:$0xff]  ;;  %v1763_v58 = vld [vmem:[#allocation6 + $0x120] sm:$0xff] }
  0x70   : > { %922 = vmatpush.bf16.msra.mxu1 %v1739_v17  ;;  %v1781_v52 = vld [vmem:[#allocation6 + $0x1b0] sm:$0xff]  ;;  %v1772_v55 = vld [vmem:[#allocation6 + $0x168] sm:$0xff]  ;;  %v1771_v59 = vld [vmem:[#allocation6 + $0x160] sm:$0xff] }
  0x71   : > { %935 = vmatpush.bf16.msra.mxu2 %v1747_v18  ;;  %v508_v46 = vpack.c.b16 %v500_v36, %v500_v36  ;;  %v509_v48 = vpack.c.b16 %v501_v40, %v501_v40  ;;  %v1789_v53 = vld [vmem:[#allocation6 + $0x1f0] sm:$0xff]  ;;  %v1780_v56 = vld [vmem:[#allocation6 + $0x1a8] sm:$0xff]  ;;  %v1779_v60 = vld [vmem:[#allocation6 + $0x1a0] sm:$0xff] }
  0x72   : > { %948 = vmatpush.bf16.msra.mxu3 %v1755_v19  ;;  %v1788_v57 = vld [vmem:[#allocation6 + $0x1e8] sm:$0xff]  ;;  %v1787_v61 = vld [vmem:[#allocation6 + $0x1e0] sm:$0xff]  ;;  %v1762_v62 = vld [vmem:[#allocation6 + $0x118] sm:$0xff] }
  0x73   : > { %910 = vmatpush.bf16.msra.mxu0 %v1730_v20  ;;  %v1770_v63 = vld [vmem:[#allocation6 + $0x158] sm:$0xff]  ;;  %v1761_v2 = vld [vmem:[#allocation6 + $0x110] sm:$0xff]  ;;  %v1760_v7 = vld [vmem:[#allocation6 + $0x108] sm:$0xff] }
  0x74   : > { %923 = vmatpush.bf16.msra.mxu1 %v1738_v21  ;;  %v1778_v0 = vld [vmem:[#allocation6 + $0x198] sm:$0xff]  ;;  %v1769_v4 = vld [vmem:[#allocation6 + $0x150] sm:$0xff]  ;;  %v1768_v8 = vld [vmem:[#allocation6 + $0x148] sm:$0xff] }
  0x75   : > { %936 = vmatpush.bf16.msra.mxu2 %v1746_v22  ;;  %v1786_v1 = vld [vmem:[#allocation6 + $0x1d8] sm:$0xff]  ;;  %v1777_v5 = vld [vmem:[#allocation6 + $0x190] sm:$0xff]  ;;  %v1776_v10 = vld [vmem:[#allocation6 + $0x188] sm:$0xff] }
  0x76   : > { %949 = vmatpush.bf16.msra.mxu3 %v1754_v23  ;;  %v1785_v6 = vld [vmem:[#allocation6 + $0x1d0] sm:$0xff]  ;;  %v1784_v11 = vld [vmem:[#allocation6 + $0x1c8] sm:$0xff]  ;;  %v365_v12 = vld [vmem:[#allocation3 + $0x18] sm:$0xff] }
  0x77   : > { %911 = vmatpush.bf16.msra.mxu0 %v1729_v24  ;;  %v364_v9 = vld [vmem:[#allocation3 + $0x10] sm:$0xff]  ;;  %v1759_v15 = vld [vmem:[#allocation6 + $0x100] sm:$0xff]  ;;  %v504_v17 = vunpack.c.l.b16 %v365_v12  ;;  %v505_v18 = vunpack.c.h.b16 %v365_v12 }
  0x78   : > { %924 = vmatpush.bf16.msra.mxu1 %v1737_v25  ;;  %v502_v13 = vunpack.c.l.b16 %v364_v9  ;;  %v503_v14 = vunpack.c.h.b16 %v364_v9  ;;  %v1767_v16 = vld [vmem:[#allocation6 + $0x140] sm:$0xff] }
  0x79   : > { %937 = vmatpush.bf16.msra.mxu2 %v1745_v26  ;;  %v1775_v19 = vld [vmem:[#allocation6 + $0x180] sm:$0xff]  ;;  %v512_v23 = vpack.c.b16 %v504_v17, %v504_v17  ;;  %v513_v24 = vpack.c.b16 %v505_v18, %v505_v18 }
  0x7a   : > { %950 = vmatpush.bf16.msra.mxu3 %v1753_v27  ;;  %v1783_v20 = vld [vmem:[#allocation6 + $0x1c0] sm:$0xff]  ;;  %v510_v21 = vpack.c.b16 %v502_v13, %v502_v13  ;;  %v511_v22 = vpack.c.b16 %v503_v14, %v503_v14 }
  0x7b   : > { %912 = vmatpush.bf16.msra.mxu0 %v1728_v28  ;;  %v1028_v9 = vld [vmem:[%s315_s13] sm:$0x3] }
  0x7c   : > { %925 = vmatpush.bf16.msra.mxu1 %v1736_v29 }
  0x7d   : > { %938 = vmatpush.bf16.msra.mxu2 %v1744_v30 }
  0x7e   : > { %951 = vmatpush.bf16.msra.mxu3 %v1752_v31 }
  0x7f   : > { %913 = vmatpush.bf16.msra.mxu0 %v1727_v34 }
  0x80   : > { %926 = vmatpush.bf16.msra.mxu1 %v1735_v35 }
  0x81   : > { %939 = vmatpush.bf16.msra.mxu2 %v1743_v38 }
  0x82   : > { %952 = vmatpush.bf16.msra.mxu3 %v1751_v39  ;;  %914 = vmatmul.bf16.vlgmr.msra.gmra.mxu0 %v506_v47 }
  0x83   : > { %958 = vmatpush.bf16.msrb.mxu0 %v1766_v42  ;;  %927 = vmatmul.bf16.vlgmr.msra.gmra.mxu1 %v507_v49 }
  0x84   : > { %971 = vmatpush.bf16.msrb.mxu1 %v1774_v43  ;;  %940 = vmatmul.bf16.vlgmr.msra.gmra.mxu2 %v508_v46 }
  0x85   : > { %984 = vmatpush.bf16.msrb.mxu2 %v1782_v44  ;;  %953 = vmatmul.bf16.vlgmr.msra.gmra.mxu3 %v509_v48 }
  0x86   : > { %997 = vmatpush.bf16.msrb.mxu3 %v1790_v45 }
  0x87   : > { %959 = vmatpush.bf16.msrb.mxu0 %v1765_v50 }
  0x88   : > { %972 = vmatpush.bf16.msrb.mxu1 %v1773_v51 }
  0x89   : > { %985 = vmatpush.bf16.msrb.mxu2 %v1781_v52 }
  0x8a   : > { %998 = vmatpush.bf16.msrb.mxu3 %v1789_v53 }
  0x8b   : > { %960 = vmatpush.bf16.msrb.mxu0 %v1764_v54 }
  0x8c   : > { %973 = vmatpush.bf16.msrb.mxu1 %v1772_v55 }
  0x8d   : > { %986 = vmatpush.bf16.msrb.mxu2 %v1780_v56 }
  0x8e   : > { %999 = vmatpush.bf16.msrb.mxu3 %v1788_v57 }
  0x8f   : > { %961 = vmatpush.bf16.msrb.mxu0 %v1763_v58 }
  0x90   : > { %974 = vmatpush.bf16.msrb.mxu1 %v1771_v59 }
  0x91   : > { %987 = vmatpush.bf16.msrb.mxu2 %v1779_v60 }
  0x92   : > { %1000 = vmatpush.bf16.msrb.mxu3 %v1787_v61 }
  0x93   : > { %962 = vmatpush.bf16.msrb.mxu0 %v1762_v62 }
  0x94   : > { %975 = vmatpush.bf16.msrb.mxu1 %v1770_v63 }
  0x95   : > { %988 = vmatpush.bf16.msrb.mxu2 %v1778_v0 }
  0x96   : > { %1001 = vmatpush.bf16.msrb.mxu3 %v1786_v1 }
  0x97   : > { %963 = vmatpush.bf16.msrb.mxu0 %v1761_v2 }
  0x98   : > { %976 = vmatpush.bf16.msrb.mxu1 %v1769_v4 }
  0x99   : > { %989 = vmatpush.bf16.msrb.mxu2 %v1777_v5 }
  0x9a   : > { %1002 = vmatpush.bf16.msrb.mxu3 %v1785_v6 }
  0x9b   : > { %964 = vmatpush.bf16.msrb.mxu0 %v1760_v7 }
  0x9c   : > { %977 = vmatpush.bf16.msrb.mxu1 %v1768_v8 }
  0x9d   : > { %990 = vmatpush.bf16.msrb.mxu2 %v1776_v10 }
  0x9e   : > { %1003 = vmatpush.bf16.msrb.mxu3 %v1784_v11 }
  0x9f   : > { %965 = vmatpush.bf16.msrb.mxu0 %v1759_v15 }
  0xa0   : > { %978 = vmatpush.bf16.msrb.mxu1 %v1767_v16 }
  0xa1   : > { %991 = vmatpush.bf16.msrb.mxu2 %v1775_v19 }
  0xa2   : > { %1004 = vmatpush.bf16.msrb.mxu3 %v1783_v20  ;;  %966 = vmatmul.bf16.vlgmr.msrb.gmra.mxu0 %v510_v21 }
  0xa3   : > { %979 = vmatmul.bf16.vlgmr.msrb.gmra.mxu1 %v511_v22 }
  0xa4   : > { %992 = vmatmul.bf16.vlgmr.msrb.gmra.mxu2 %v512_v23 }
  0xa5   : > { %1005 = vmatmul.bf16.vlgmr.msrb.gmra.mxu3 %v513_v24 }
  0xff   : > { %v915_v25 = vpop.f32.mrf.mxu0 }
 0x100   : > { %v928_v26 = vpop.f32.mrf.mxu1 }
 0x101   : > { %v929_v33 = vadd.f32 %v928_v26, %v915_v25 }
 0x107   : > { %v941_v27 = vpop.f32.mrf.mxu2  ;;  %v917_v29 = vpop.f32.mrf.mxu0 }
 0x108   : > { %v954_v28 = vpop.f32.mrf.mxu3  ;;  %v930_v30 = vpop.f32.mrf.mxu1  ;;  %v942_v34 = vadd.f32 %v941_v27, %v929_v33 }
 0x10a   : > { %v955_v35 = vadd.f32 %v954_v28, %v942_v34 }
 0x10f   : > { %v943_v31 = vpop.f32.mrf.mxu2 }
 0x110   : > { %v956_v32 = vpop.f32.mrf.mxu3 }
 0x11f   : > { %v967_v36 = vpop.f32.mrf.mxu0 }
 0x120   : > { %v980_v37 = vpop.f32.mrf.mxu1  ;;  %v968_v38 = vadd.f32 %v967_v36, %v955_v35 }
 0x122   : > { %v981_v39 = vadd.f32 %v980_v37, %v968_v38 }
 0x127   : > { %v993_v40 = vpop.f32.mrf.mxu2  ;;  %v969_v43 = vpop.f32.mrf.mxu0 }
 0x128   : > { %v1006_v41 = vpop.f32.mrf.mxu3  ;;  %v994_v42 = vadd.f32 %v993_v40, %v981_v39  ;;  %v982_v44 = vpop.f32.mrf.mxu1 }
 0x12a   : > { %v1007_v45 = vadd.f32 %v1006_v41, %v994_v42 }
 0x12c   : > { %v1010_v46 = vrot.slane %v1007_v45, 4  ;;  %v1017_v47 = vmul.f32 %v1007_v45, %v1007_v45 }
 0x12e   : > { %v1011_v48 = vadd.f32 %v1010_v46, %v1007_v45  ;;  %v1018_v49 = vrot.slane %v1017_v47, 4 }
 0x12f   : > { %v995_v50 = vpop.f32.mrf.mxu2 }
 0x130   : > { %v1008_v51 = vpop.f32.mrf.mxu3  ;;  %v1012_v52 = vrot.slane %v1011_v48, 2  ;;  %v1019_v53 = vadd.f32 %v1018_v49, %v1017_v47 }
 0x132   : > { %v1013_v54 = vadd.f32 %v1012_v52, %v1011_v48  ;;  %v1020_v55 = vrot.slane %v1019_v53, 2 }
 0x134   : > { %v1014_v56 = vrot.slane %v1013_v54, 1  ;;  %v1021_v57 = vadd.f32 %v1020_v55, %v1019_v53 }
 0x136   : > { %v1015_v58 = vadd.f32 %v1014_v56, %v1013_v54  ;;  %v1022_v59 = vrot.slane %v1021_v57, 1 }
 0x138   : > { %v1016_v60 = vmul.f32 0.5, %v1015_v58  ;;  %v1023_v61 = vadd.f32 %v1022_v59, %v1021_v57 }
 0x13a   : > { %v1024_v62 = vmul.f32 0.5, %v1023_v61  ;;  %v1025_v63 = vmul.f32 %v1016_v60, %v1016_v60 }
 0x13c   : > { %v1026_v0 = vsub.f32 %v1024_v62, %v1025_v63 }
 0x13e   : > { %v1027_v1 = vmax.f32 %v1026_v0, 0.0 }
 0x140   : > { %v1029_v2 = vadd.f32 1e-05, %v1027_v1 }
 0x142   : > { %1916 = vrsqrt.f32 %v1029_v2  ;;  %vm1036_vm2 = vweird.f32 %v1029_v2 }
 0x148   : > { %v1917_v4 = vpop.eup %1916 }
 0x149   : > { %v1031_v5 = vmul.f32 %v1917_v4, %v1029_v2  ;;  %vm1037_vm1 = vweird.f32 %v1917_v4 }
 0x14a   : > { %vm1038_vm3 = vmor %vm1036_vm2, %vm1037_vm1 }
 0x14b   : > { %v1032_v6 = vmul.f32 %v1917_v4, %v1031_v5 }
 0x14d   : > { %v1033_v7 = vmul.f32 0.5, %v1032_v6 }
 0x14f   : > { %v1034_v8 = vsub.f32 1.5, %v1033_v7 }
 0x151   : > { %v1035_v10 = vmul.f32 %v1917_v4, %v1034_v8 }
 0x153   : > { %v1039_v11 = vsel %vm1038_vm3, %v1917_v4, %v1035_v10 }
 0x154   : > { %v1040_v12 = vmul.f32 %v1039_v11, %v1028_v9 }
 0x156   : > { %v1041_v13 = vmul.f32 %v1040_v12, %v1016_v60  ;;  %v1046_v15 = vperm.slane %v1040_v12, 0 }
 0x158   : > { %v1043_v14 = vrot.slane %v1041_v13, 7  ;;  %v1047_v17 = vmul.f32 %v1046_v15, %v1007_v45 }
 0x15a   : > { %v1045_v16 = vsub.f32 %v1028_v9, %v1043_v14 }
 0x15c   : > { %v1048_v18 = vperm.slane %v1045_v16, 1 }
 0x15e   : > { %v1049_v19 = vadd.f32 %v1048_v18, %v1047_v17 }
 0x160   : > { %vm1050_vm4 = vcmp.gt.f32.partialorder %v1049_v19, 0.0  ;;  %v1051_v20 = vmul.f32 0.01, %v1049_v19 }
 0x162   : > { %v1052_v21 = vsel %vm1050_vm4, %v1049_v19, %v1051_v20 }
 0x163   : > { %v1053_v22 = vmul.f32 %v2420_v3, %v1052_v21 }
 0x165   : > { %v1054_v23 = vpack.c.bf16 %v1053_v22, %v1053_v22 }
 0x167   : > { %1055 = vst [vmem:[#allocation2] sm:$0xf] %v1054_v23 }
 0x168 PF: > { %p1656_p1 = scmp.le.s32.totalorder %s2255_s28, 0 }
 0x16a   : > { %1059 = sbr.rel (%p1656_p1) target bundleno = 585 (0x249), region = 72 }
 0x16f   : > { %v1798_v24 = vld [vmem:[%s2402_s8 + $0x38] sm:$0xff]  ;;  %v1797_v25 = vld [vmem:[%s2402_s8 + $0x30] sm:$0xff]  ;;  %v1796_v26 = vld [vmem:[%s2402_s8 + $0x28] sm:$0xff] }
 0x170   : > { %1125 = vmatpush.bf16.msra.mxu0 %v1798_v24  ;;  %v1795_v27 = vld [vmem:[%s2402_s8 + $0x20] sm:$0xff]  ;;  %v1794_v28 = vld [vmem:[%s2402_s8 + $0x18] sm:$0xff]  ;;  %v1793_v29 = vld [vmem:[%s2402_s8 + $0x10] sm:$0xff] }
 0x171   : > { %v1792_v30 = vld [vmem:[%s2402_s8 + $0x8] sm:$0xff]  ;;  %v1791_v31 = vld [vmem:[%s2402_s8] sm:$0xff]  ;;  %v1060_v32 = vld [vmem:[#allocation2] sm:$0xf] }
 0x172   : > { %v1156_v59 = vld [vmem:[%s315_s13] sm:$0x3] }
 0x174   : > { %1126 = vmatpush.bf16.msra.mxu0 %v1797_v25 }
 0x178   : > { %1127 = vmatpush.bf16.msra.mxu0 %v1796_v26 }
 0x17c   : > { %1128 = vmatpush.bf16.msra.mxu0 %v1795_v27 }
 0x180   : > { %1129 = vmatpush.bf16.msra.mxu0 %v1794_v28 }
 0x184   : > { %1130 = vmatpush.bf16.msra.mxu0 %v1793_v29 }
 0x188   : > { %1131 = vmatpush.bf16.msra.mxu0 %v1792_v30 }
 0x18c   : > { %1132 = vmatpush.bf16.msra.mxu0 %v1791_v31 }
 0x18f   : > { %1133 = vmatmul.bf16.vlgmr.msra.gmra.mxu0 %v1060_v32 }
 0x20c   : > { %v1134_v33 = vpop.f32.mrf.mxu0 }
 0x20d   : > { %v1138_v34 = vrot.slane %v1134_v33, 4  ;;  %v1145_v35 = vmul.f32 %v1134_v33, %v1134_v33 }
 0x20f   : > { %v1139_v36 = vadd.f32 %v1138_v34, %v1134_v33  ;;  %v1146_v37 = vrot.slane %v1145_v35, 4 }
 0x211   : > { %v1140_v38 = vrot.slane %v1139_v36, 2  ;;  %v1147_v39 = vadd.f32 %v1146_v37, %v1145_v35 }
 0x213   : > { %v1141_v40 = vadd.f32 %v1140_v38, %v1139_v36  ;;  %v1148_v41 = vrot.slane %v1147_v39, 2 }
 0x214   : > { %v1136_v42 = vpop.f32.mrf.mxu0 }
 0x215   : > { %v1142_v43 = vrot.slane %v1141_v40, 1  ;;  %v1149_v44 = vadd.f32 %v1148_v41, %v1147_v39 }
 0x217   : > { %v1143_v45 = vadd.f32 %v1142_v43, %v1141_v40  ;;  %v1150_v46 = vrot.slane %v1149_v44, 1 }
 0x219   : > { %v1144_v47 = vmul.f32 0.5, %v1143_v45  ;;  %v1151_v48 = vadd.f32 %v1150_v46, %v1149_v44 }
 0x21b   : > { %v1152_v49 = vmul.f32 0.5, %v1151_v48  ;;  %v1153_v50 = vmul.f32 %v1144_v47, %v1144_v47 }
 0x21d   : > { %v1154_v51 = vsub.f32 %v1152_v49, %v1153_v50 }
 0x21f   : > { %v1155_v52 = vmax.f32 %v1154_v51, 0.0 }
 0x221   : > { %v1157_v53 = vadd.f32 1e-05, %v1155_v52 }
 0x223   : > { %1918 = vrsqrt.f32 %v1157_v53  ;;  %vm1164_vm6 = vweird.f32 %v1157_v53 }
 0x229   : > { %v1919_v54 = vpop.eup %1918 }
 0x22a   : > { %v1159_v55 = vmul.f32 %v1919_v54, %v1157_v53  ;;  %vm1165_vm5 = vweird.f32 %v1919_v54 }
 0x22b   : > { %vm1166_vm7 = vmor %vm1164_vm6, %vm1165_vm5 }
 0x22c   : > { %v1160_v56 = vmul.f32 %v1919_v54, %v1159_v55 }
 0x22e   : > { %v1161_v57 = vmul.f32 0.5, %v1160_v56 }
 0x230   : > { %v1162_v58 = vsub.f32 1.5, %v1161_v57 }
 0x232   : > { %v1163_v60 = vmul.f32 %v1919_v54, %v1162_v58 }
 0x234   : > { %v1167_v61 = vsel %vm1166_vm7, %v1919_v54, %v1163_v60 }
 0x235   : > { %v1168_v62 = vmul.f32 %v1167_v61, %v1156_v59 }
 0x237   : > { %v1169_v63 = vmul.f32 %v1168_v62, %v1144_v47  ;;  %v1174_v1 = vperm.slane %v1168_v62, 0 }
 0x239   : > { %v1171_v0 = vrot.slane %v1169_v63, 7  ;;  %v1175_v4 = vmul.f32 %v1174_v1, %v1134_v33 }
 0x23b   : > { %v1173_v2 = vsub.f32 %v1156_v59, %v1171_v0 }
 0x23d   : > { %v1176_v5 = vperm.slane %v1173_v2, 1 }
 0x23f   : > { %v1177_v6 = vadd.f32 %v1176_v5, %v1175_v4 }
 0x241   : > { %vm1178_vm8 = vcmp.gt.f32.partialorder %v1177_v6, 0.0  ;;  %v1179_v7 = vmul.f32 0.01, %v1177_v6 }
 0x243   : > { %v1180_v8 = vsel %vm1178_vm8, %v1177_v6, %v1179_v7 }
 0x244   : > { %v1181_v9 = vmul.f32 %v2420_v3, %v1180_v8 }
 0x246   : > { %v1182_v10 = vpack.c.bf16 %v1181_v9, %v1181_v9 }
 0x248   : > { %1183 = vst [vmem:[#allocation2] sm:$0xf] %v1182_v10 }
 0x249 PF: > { %p1689_p6 = scmp.ne.s32.totalorder %s2255_s28, 1 }
 0x24a   : > { %s2498_s14 = sld [smem:[#allocation20_spill]] (!%p1689_p6) }
 0x24b   : > { %1187 = sbr.rel (%p1689_p6) target bundleno = 758 (0x2f6), region = 76 }
 0x250   : > { %v1806_v11 = vld [vmem:[#allocation10 + $0x38] sm:$0xff]  ;;  %v1805_v12 = vld [vmem:[#allocation10 + $0x30] sm:$0xff]  ;;  %v1804_v13 = vld [vmem:[#allocation10 + $0x28] sm:$0xff] }
 0x251   : > { %1257 = vmatpush.bf16.msra.mxu0 %v1806_v11  ;;  %v1803_v14 = vld [vmem:[#allocation10 + $0x20] sm:$0xff]  ;;  %v1802_v15 = vld [vmem:[#allocation10 + $0x18] sm:$0xff]  ;;  %v1801_v16 = vld [vmem:[#allocation10 + $0x10] sm:$0xff] }
 0x252   : > { %v1800_v17 = vld [vmem:[#allocation10 + $0x8] sm:$0xff]  ;;  %v1799_v3 = vld [vmem:[#allocation10] sm:$0xff]  ;;  %v1188_v18 = vld [vmem:[#allocation2] sm:$0xf] }
 0x253   : > { %v1920_v19 = vld [vmem:[%s2498_s14] ss:$0 sm:$0xff] }
 0x255   : > { %1258 = vmatpush.bf16.msra.mxu0 %v1805_v12 }
 0x259   : > { %1259 = vmatpush.bf16.msra.mxu0 %v1804_v13 }
 0x25d   : > { %1260 = vmatpush.bf16.msra.mxu0 %v1803_v14 }
 0x261   : > { %1261 = vmatpush.bf16.msra.mxu0 %v1802_v15 }
 0x265   : > { %1262 = vmatpush.bf16.msra.mxu0 %v1801_v16 }
 0x269   : > { %1263 = vmatpush.bf16.msra.mxu0 %v1800_v17 }
 0x26d   : > { %1264 = vmatpush.bf16.msra.mxu0 %v1799_v3 }
 0x270   : > { %1265 = vmatmul.bf16.vlgmr.msra.gmra.mxu0 %v1188_v18 }
 0x2ed   : > { %v1266_v20 = vpop.f32.mrf.mxu0 }
 0x2ee   : > { %v1267_v21 = vadd.f32 %v1920_v19, %v1266_v20 }
 0x2f0   : > { %1270 = vst [vmem:[#allocation11] sm:$0xff] %v1267_v21 }
 0x2f5   : > { %v1268_v22 = vpop.f32.mrf.mxu0 }
 0x2f6 PF: > { %p1851_p10 = scmp.eq.s32.totalorder %s2255_s28, 1  ;;  %s2185_s21 = smov [#allocation11]  }
 0x2f7   : > { %s1277_s17 = sshll.u32 %s2185_s21, 4  ;;  %s2499_s11 = sld [smem:[#allocation21_spill]]  ;;  %s1278_s17 = int_to_ptr.vmem [resolvable:$true] %s1277_s17 }
 0x2fd   : > { %s1279_s5 = sshll.u32 %s2499_s11, 4  ;;  %s1280_s5 = int_to_ptr.hbm [resolvable:$true] %s1279_s5 }
 0x2fe   : > { %1824 = dma.vmem_to_hbm [thread:$0]  (%p1851_p10), %s1278_s17, 128, %s1280_s5, [#allocation5]  }
 0x2ff   : > { %2148 = dma.done.wait (%p1851_p10), [#allocation5], 128  }
 0x300   : > { %2150 = vsyncadd (%p1851_p10), [#allocation5], 4294967168 }
 0x301 PF: > { %p16_p8 = scmp.ge.s32.totalorder %s2294_s20, 4   ;;  %s2500_s21 = smov %s2157_s22 }
 0x302   : > { %s2501_s22 = smov %s2161_s23  ;;  %s2502_s23 = smov %s2358_s19 }
 0x303   : > { %s2503_s24 = smov %s2169_s25  ;;  %s2504_s25 = smov %s2173_s26 }
 0x304   : > { %s2505_s26 = smov %s2313_s16  ;;  %s2506_s27 = smov %s2294_s20 }
 0x305   :  { %18 = sbr.rel (!%p16_p8) target bundleno = 11 (0xb), region = 115 }
 0x30a   :  { %1293 = vsyncpa [#allocation4], 1 }
 0x30b   :  { %1295 = vsyncpa [#allocation4 + $0x1], 1 }
 0x30c   :  { %1296 = vsyncpa [#allocation7], 1 }
 0x30d   :  { %1297 = vsyncpa [#allocation5], 1 }
 0x30e   :  { %1299 = vsyncpa [#allocation5 + $0x1], 1 }

</bundles_post_ra>
